<compile_context>
chip_gen: v6e
topology: v6e:2x2x1
jax: 0.10.0
libtpu: 0.0.40
codegen_flags: <defaults>
</compile_context>

<pallas_src>
import functools
import math

import jax
import jax.numpy as jnp
from jax.experimental import pallas as pl
from jax.experimental.pallas import tpu as pltpu

_LANE = 128
_JNP_FALLBACK_BYTES = 256 * 1024  # below this, launch overhead dominates a single-block stream


# ----------------------------------------------------------------------------- kernels


def _mask_mul_kernel(mask_ref, x_ref, o_ref):
    # Streaming path: (rows, T) tile times a resident (1, T) keep-mask. One multiply per vreg.
    o_ref[...] = x_ref[...] * mask_ref[...]


def _windowed_mask_kernel(col_blk_ref, mask_ref, x_ref, o_ref):
    # Windowed path: the scalar-prefetched column-block table is consumed only by the
    # index_maps; the body is the same broadcast multiply on a (rows, 128) tile.
    del col_blk_ref
    o_ref[...] = x_ref[...] * mask_ref[...]


# ----------------------------------------------------------------------------- sampling


def _sample_mask_params(key, T, *, num_masks, size, p):
    """Mirror the PyTorch module's sampling: outer coin flip + per-mask (start, end)."""
    keys = jax.random.split(key, 1 + 2 * num_masks)
    apply_flag = jax.random.uniform(keys[0]) <= p          # `random.random() <= self.p`
    starts, ends = [], []
    for i in range(num_masks):                              # static Python loop
        value = jax.random.uniform(keys[1 + 2 * i]) * size            # U(0, size)
        min_value = jax.random.uniform(keys[2 + 2 * i]) * (T - value)  # U(0, T - value)
        starts.append(min_value.astype(jnp.int32))
        ends.append((min_value + value).astype(jnp.int32))
    return apply_flag, jnp.stack(starts), jnp.stack(ends)


def _keep_mask(apply_flag, starts, ends, T, dtype):
    """Combined (T,) keep mask: 1.0 keep, 0.0 masked. All-ones if the coin flip failed."""
    t = jnp.arange(T, dtype=jnp.int32)
    masked_any = jnp.any((t[None, :] >= starts[:, None]) & (t[None, :] < ends[:, None]), axis=0)
    keep = jnp.logical_not(masked_any & apply_flag)
    return keep.astype(dtype)


# ----------------------------------------------------------------------------- tiling helpers


def _sublane(dtype) -> int:
    # Sub-32-bit dtypes pack along sublanes: 8 rows f32, 16 bf16, 32 int8/fp8.
    itemsize = jnp.dtype(dtype).itemsize
    return 8 * max(1, 4 // itemsize)


def _device_tuning():
    """(target_block_bytes, min_row_blocks) per TPU generation.

    Double-buffered in+out footprint (~4x target) stays inside every generation's default
    scoped-VMEM limit (v5e 16 MiB / v6e 32 MiB / v7x 32 MiB), so no vmem_limit_bytes override.
    """
    try:
        kind = jax.devices()[0].device_kind.lower()
    except Exception:
        return 2 * 1024 * 1024, 1
    if "v5" in kind:
        return 2 * 1024 * 1024, 1          # ~8 MiB footprint, safe on v5e's 16 MiB default
    if "v6" in kind:
        return 4 * 1024 * 1024, 1          # ~16 MiB footprint < 32 MiB default
    if "v7" in kind or "7x" in kind:
        return 6 * 1024 * 1024, 2          # ~24 MiB < 32 MiB; 2 TCs want >= 2 row blocks
    return 2 * 1024 * 1024, 1


def _row_block(R, row_bytes, target_bytes, sublane, min_blocks):
    """Pick rows-per-block: large (amortize ~0.35us/step), sublane-aligned, >=min_blocks steps."""
    rows = max(1, target_bytes // max(1, row_bytes))
    rows = max(sublane, (rows // sublane) * sublane)
    if min_blocks > 1 and R > sublane:
        cap = pl.cdiv(pl.cdiv(R, min_blocks), sublane) * sublane
        rows = min(rows, cap)
    if rows >= R:
        rows = R                            # full dim is always a legal block shape
    return rows, pl.cdiv(R, rows)


# ----------------------------------------------------------------------------- entry point


@functools.partial(jax.jit, static_argnames=("num_masks", "size", "p"))
def time_mask(x, key, *, num_masks, size, p):
    """Apply TimeMask to x of shape (..., F, T); masking is along the last (time) axis."""
    orig_shape = x.shape
    T = int(orig_shape[-1])
    R = 1
    for d in orig_shape[:-1]:
        R *= int(d)
    dtype = x.dtype
    itemsize = jnp.dtype(dtype).itemsize

    if num_masks <= 0 or size <= 0 or T == 0 or R == 0:
        return x

    apply_flag, starts, ends = _sample_mask_params(key, T, num_masks=num_masks, size=size, p=p)
    keep = _keep_mask(apply_flag, starts, ends, T, dtype)          # (T,)

    x2d = x.reshape(R, T)
    total_bytes = R * T * itemsize

    # Tiny inputs: plain jnp beats pallas_call launch overhead.
    if total_bytes < _JNP_FALLBACK_BYTES:
        return (x2d * keep[None, :]).reshape(orig_shape)

    target_bytes, min_row_blocks = _device_tuning()
    sublane = _sublane(dtype)

    # ---------------- Path 1: in-place windowed masking (only masked column blocks move). ----
    col_blocks_total = pl.cdiv(T, _LANE)
    windows_per_mask = (size - 1) // _LANE + 2       # max 128-col blocks one mask can span
    num_windows = num_masks * windows_per_mask
    use_windowed = (T >= _LANE) and (2 * num_windows <= col_blocks_total)

    if use_windowed:
        try:
            base_blk = jnp.clip(starts // _LANE, 0, col_blocks_total - 1).astype(jnp.int32)
            offs = jnp.arange(windows_per_mask, dtype=jnp.int32)
            col_blk = jnp.minimum(base_blk[:, None] + offs[None, :],
                                  col_blocks_total - 1).reshape(-1).astype(jnp.int32)

            mask_row = keep.reshape(1, T)
            rows_w, n_row_blocks = _row_block(R, _LANE * itemsize, target_bytes,
                                              sublane, min_row_blocks)

            out2d = pl.pallas_call(
                _windowed_mask_kernel,
                grid_spec=pltpu.PrefetchScalarGridSpec(
                    num_scalar_prefetch=1,
                    grid=(n_row_blocks, num_windows),
                    in_specs=[
                        pl.BlockSpec((1, _LANE), lambda r, w, cb: (0, cb[w])),
                        pl.BlockSpec((rows_w, _LANE), lambda r, w, cb: (r, cb[w])),
                    ],
                    out_specs=pl.BlockSpec((rows_w, _LANE), lambda r, w, cb: (r, cb[w])),
                ),
                out_shape=jax.ShapeDtypeStruct((R, T), dtype),
                # Output aliases x2d (operand index 2, counting the scalar-prefetch operand):
                # column blocks the grid never visits keep their input values in HBM.
                input_output_aliases={2: 0},
                compiler_params=pltpu.CompilerParams(
                    dimension_semantics=("parallel", "arbitrary")),
            )(col_blk, mask_row, x2d)
            return out2d.reshape(orig_shape)
        except Exception:
            # TODO(synk): defensive fallback only; drop once the aliased windowed path is
            #             verified on all target jax versions.
            pass

    # ---------------- Path 2: full streaming multiply (lane-dense row tiles). ----------------
    R2, T2 = R, T
    x_rows = x2d
    mask_row = keep.reshape(1, T)
    if T % _LANE != 0:
        # Fold k rows into the lane axis so the output last dim is lane-dense
        # (avoids masked partial stores). Pure wrapper plumbing; kernel unchanged.
        k = _LANE // math.gcd(T, _LANE)
        if k > 1 and R % k == 0:
            R2, T2 = R // k, k * T
            x_rows = x2d.reshape(R2, T2)
            mask_row = jnp.tile(keep, k).reshape(1, T2)

    rows_per_block, n_blocks = _row_block(R2, T2 * itemsize, target_bytes,
                                          sublane, min_row_blocks)

    out2d = pl.pallas_call(
        _mask_mul_kernel,
        grid=(n_blocks,),
        in_specs=[
            pl.BlockSpec((1, T2), lambda i: (0, 0)),                 # mask stays resident
            pl.BlockSpec((rows_per_block, T2), lambda i: (i, 0)),
        ],
        out_specs=pl.BlockSpec((rows_per_block, T2), lambda i: (i, 0)),
        out_shape=jax.ShapeDtypeStruct((R2, T2), dtype),
        compiler_params=pltpu.CompilerParams(dimension_semantics=("parallel",)),
    )(mask_row, x_rows)
    return out2d.reshape(orig_shape)


# ----------------------------------------------------------------------------- jnp reference


def _time_mask_reference(x, key, *, num_masks, size, p):
    T = x.shape[-1]
    if num_masks <= 0 or size <= 0:
        return x
    apply_flag, starts, ends = _sample_mask_params(key, T, num_masks=num_masks, size=size, p=p)
    keep = _keep_mask(apply_flag, starts, ends, T, x.dtype)
    return x * keep.reshape((1,) * (x.ndim - 1) + (T,))


# ----------------------------------------------------------------------------- test


if __name__ == "__main__":
    key = jax.random.PRNGKey(0)
    k_x, k_m1, k_m2 = jax.random.split(key, 3)

    # Case 1: long time axis, narrow masks -> exercises the aliased windowed path.
    B, F, T = 2, 64, 2048
    x1 = jax.random.normal(k_x, (B, F, T), dtype=jnp.float32)
    y1 = jax.block_until_ready(time_mask(x1, k_m1, num_masks=2, size=64, p=1.0))
    e1 = _time_mask_reference(x1, k_m1, num_masks=2, size=64, p=1.0)
    assert y1.shape == x1.shape and y1.dtype == x1.dtype
    assert bool(jnp.allclose(y1, e1)), "windowed path mismatch vs jnp reference"

    # Case 2: short, non-128-multiple time axis, wide masks, bf16 -> streaming path + row fold.
    B2, F2, T2 = 4, 128, 400
    x2 = jax.random.normal(k_x, (B2, F2, T2), dtype=jnp.bfloat16)
    y2 = jax.block_until_ready(time_mask(x2, k_m2, num_masks=2, size=100, p=0.5))
    e2 = _time_mask_reference(x2, k_m2, num_masks=2, size=100, p=0.5)
    assert y2.shape == x2.shape and y2.dtype == x2.dtype
    assert bool(jnp.allclose(y2, e2)), "streaming path mismatch vs jnp reference"

    print("KERNEL_OK")
</pallas_src>

<mosaic_0001>
module attributes {stable_mosaic.version = 11 : i64} {
  func.func @_windowed_mask_kernel(%arg0: i32, %arg1: i32, %arg2: memref<4xi32, #tpu.memory_space<smem>>, %arg3: memref<1x128xf32, #tpu.memory_space<vmem>>, %arg4: memref<128x128xf32, #tpu.memory_space<vmem>>, %arg5: memref<128x128xf32, #tpu.memory_space<vmem>>) attributes {dimension_semantics = [#tpu.dimension_semantics<parallel>, #tpu.dimension_semantics<arbitrary>], iteration_bounds = array<i64: 1, 4>, scalar_prefetch = 1 : i64, scratch_operands = 0 : i64, tpu.core_type = #tpu.core_type<tc>, window_params = [{transform_indices = @transform_0, window_bounds = array<i64: 1, 128>}, {transform_indices = @transform_1, window_bounds = array<i64: 128, 128>}, {transform_indices = @transform_2, window_bounds = array<i64: 128, 128>}]} {
    %c0 = arith.constant 0 : index
    %c0_0 = arith.constant 0 : index
    %0 = vector.load %arg4[%c0, %c0_0] : memref<128x128xf32, #tpu.memory_space<vmem>>, vector<128x128xf32>
    %c0_1 = arith.constant 0 : index
    %c0_2 = arith.constant 0 : index
    %1 = vector.load %arg3[%c0_1, %c0_2] : memref<1x128xf32, #tpu.memory_space<vmem>>, vector<1x128xf32>
    %2 = vector.broadcast %1 : vector<1x128xf32> to vector<128x128xf32>
    %3 = arith.mulf %0, %2 : vector<128x128xf32>
    %c0_3 = arith.constant 0 : index
    %c0_4 = arith.constant 0 : index
    %4 = vector.load %arg5[%c0_3, %c0_4] : memref<128x128xf32, #tpu.memory_space<vmem>>, vector<128x128xf32>
    tpu.vector_store %arg5[%c0_3, %c0_4], %3 {strides = array<i32>} : memref<128x128xf32, #tpu.memory_space<vmem>>, vector<128x128xf32>,
    return
  }
  func.func @transform_0(%arg0: i32, %arg1: i32, %arg2: memref<4xi32, #tpu.memory_space<smem>>) -> (i32, i32) {
    %0 = arith.index_cast %arg1 : i32 to index
    %1 = memref.load %arg2[%0] : memref<4xi32, #tpu.memory_space<smem>>
    %c0_i32 = arith.constant 0 : i32
    %c0_i32_0 = arith.constant 0 : i32
    return %c0_i32, %1 : i32, i32
  }
  func.func @transform_1(%arg0: i32, %arg1: i32, %arg2: memref<4xi32, #tpu.memory_space<smem>>) -> (i32, i32) {
    %0 = arith.index_cast %arg1 : i32 to index
    %1 = memref.load %arg2[%0] : memref<4xi32, #tpu.memory_space<smem>>
    %c0_i32 = arith.constant 0 : i32
    return %arg0, %1 : i32, i32
  }
  func.func @transform_2(%arg0: i32, %arg1: i32, %arg2: memref<4xi32, #tpu.memory_space<smem>>) -> (i32, i32) {
    %0 = arith.index_cast %arg1 : i32 to index
    %1 = memref.load %arg2[%0] : memref<4xi32, #tpu.memory_space<smem>>
    %c0_i32 = arith.constant 0 : i32
    return %arg0, %1 : i32, i32
  }
}

</mosaic_0001>

<bundles_post_ra>
// kernel: time_mask.1
= control target key start
LH: loop header
LB: loop body
LE: loop exit
PB: predicated region body
PF: predicated region fallthrough
CT: control target
= control target key end

     0   :  { %s852_s0 = inlined_call_operand.vmem [shape: s32[4], index: 0, kind: input, shape index: {}]   ;;  %s853_s1 = inlined_call_operand.vmem [shape: f32[1,2048], index: 1, kind: input, shape index: {}]   ;;  %s854_s2 = inlined_call_operand.vmem [shape: f32[128,2048], index: 2, kind: input, shape index: {}, may-alias: {2,3}]   ;;  %s855_s3 = inlined_call_operand.vmem [shape: f32[128,2048], index: 3, kind: output, shape index: {}, may-alias: {2,3}]  }
   0x1   :  { %s8_s14 = sshll.u32 %s852_s0, 4  ;;  %s9_s14 = int_to_ptr.vmem [resolvable:$true] %s8_s14 }
   0x2   :  { %s599_s15 = scalar_lea.vmem %s9_s14, 16  ;;  %p604_p1 = scmp.lt.s32.totalorder %s9_s14, %s9_s14 }
   0x3   :  { %p600_p0 = scmp.ne.s32.totalorder %s9_s14, %s599_s15  ;;  %p605_p2 = scmp.lt.s32.totalorder %s599_s15, %s599_s15 }
   0x5   :  { %p606_p3 = por %p605_p2, %p604_p1 }
   0x7   :  { %p607_p4 = pnand %p606_p3, %p600_p0 }
   0x9   :  { %610 = shalt.err (!%p607_p4)  }
   0xa   :  { %s669_s16 = smov [#allocation3]  }
   0xb   :  { %11 = dma.vmem_to_smem %s9_s14, 16, %s669_s16, [#allocation2] }
   0xc   :  { %639 = dma.done.wait [#allocation2], 16 }
   0xd   :  { %640 = vsyncadd [#allocation2], 4294967280 }
   0xe   :  { %13 = sfence }
   0xf   :  { %s693_s17 = smov 0   ;;  %s695_s18 = smov 0  }
  0x10   :  { %s697_s19 = smov 0   ;;  %s699_s0 = smov 0  }
  0x11   :  { %s701_s20 = smov 0   ;;  %s703_s21 = smov 0  }
  0x12   :  { %s705_s22 = smov 0  }
  0x13 LB: > { %s28_s23 = sadd.s32 1, %s663_s21  ;;  %s528_s24 = sadd.s32 4294967295, %s667_s22   ;;  %s667_s22 = sphi %s705_s22, %s19_s22   ;;  %s663_s21 = sphi %s703_s21, %s863_s21   ;;  %s659_s20 = sphi %s701_s20, %s862_s20   ;;  %s655_s0 = sphi %s699_s0, %s861_s0   ;;  %s651_s19 = sphi %s697_s19, %s860_s19   ;;  %s647_s18 = sphi %s695_s18, %s859_s18   ;;  %s643_s17 = sphi %s693_s17, %s858_s17  }
  0x14   : > { %p29_p5 = scmp.ge.s32.totalorder %s28_s23, 4  ;;  %s63_s25 = sld [smem:[#allocation3 + %s663_s21]] }
  0x15   : > { %p77_p6 = scmp.ne.s32.totalorder %s655_s0, %s651_s19  ;;  %p78_p7 = scmp.eq.s32.totalorder %s667_s22, 0 }
  0x16   : > { %s865_s23 = smov (%p29_p5, %s28_s23), 0  ;;  %s93_s26 = sld [smem:[#allocation3 + %s663_s21]] }
  0x17   : > { %s64_s27 = sld [smem:[#allocation3 + %s865_s23]]  ;;  %p738_p8 = por %p78_p7, %p77_p6 }
  0x18   : > { %s94_s29 = sld [smem:[#allocation3 + %s865_s23]]  ;;  %p110_p9 = scmp.ne.s32.totalorder %s647_s18, %s643_s17 }
  0x19   : > { %p111_p10 = scmp.eq.s32.totalorder %s528_s24, 3  ;;  %s70_s4 = sadd.s32 1, %s655_s0 }
  0x1a   : > { %s100_s6 = sadd.s32 1, %s647_s18  ;;  %p531_p0 = scmp.ge.s32.totalorder %s667_s22, 4 }
  0x1b   : > { %p745_p11 = por %p111_p10, %p110_p9 }
  0x1d   : > { %s66_s5 = ssub.s32 %s63_s25, %s64_s27  ;;  %133 = sbr.rel (%p531_p0) target bundleno = 60 (0x3c), region = 16 }
  0x1e   : > { %p68_p12 = scmp.eq.s32.totalorder %s66_s5, 0  ;;  %s96_s7 = ssub.s32 %s93_s26, %s94_s29 }
  0x1f   : > { %p98_p13 = scmp.eq.s32.totalorder %s96_s7, 0 }
  0x20   : > { %s752_s8 = scalar_select %p68_p12, %s655_s0, %s70_s4  }
  0x21   : > { %s755_s9 = scalar_select %p98_p13, %s647_s18, %s100_s6  }
  0x22   : > { %144 = sbr.rel (!%p738_p8) target bundleno = 60 (0x3c), region = 24  ;;  %s146_s10 = sand.u32 (%p738_p8), 1, %s655_s0  }
  0x23   : > { %s149_s11 = sld [smem:[#allocation3 + %s663_s21]] (%p738_p8)  ;;  %s532_s12 = sshll.u32 (%p738_p8), %s146_s10, 7 }
  0x24   : > { %s148_s24 = scalar_lea.vmem (%p738_p8), [#allocation4], %s532_s12 }
  0x29   : > { %s533_s13 = sshll.u32 %s149_s11, 3 }
  0x2a   : > { %s765_s16 = scalar_lea.vmem %s854_s2, %s533_s13 }
  0x2b   : > { %v213_v0 = vld [vmem:[%s765_s16] sm:$0xff] }
  0x2c   : > { %v215_v1 = vld [vmem:[%s765_s16 + $0x80] sm:$0xff]  ;;  %214 = vst [vmem:[%s148_s24] sm:$0xff] %v213_v0 }
  0x2d   : > { %v217_v2 = vld [vmem:[%s765_s16 + $0x100] sm:$0xff]  ;;  %216 = vst [vmem:[%s148_s24 + $0x8] sm:$0xff] %v215_v1 }
  0x2e   : > { %218 = vst [vmem:[%s148_s24 + $0x10] sm:$0xff] %v217_v2  ;;  %v219_v3 = vld [vmem:[%s765_s16 + $0x180] sm:$0xff] }
  0x2f   : > { %v221_v4 = vld [vmem:[%s765_s16 + $0x200] sm:$0xff]  ;;  %220 = vst [vmem:[%s148_s24 + $0x18] sm:$0xff] %v219_v3 }
  0x30   : > { %v223_v5 = vld [vmem:[%s765_s16 + $0x280] sm:$0xff]  ;;  %222 = vst [vmem:[%s148_s24 + $0x20] sm:$0xff] %v221_v4 }
  0x31   : > { %224 = vst [vmem:[%s148_s24 + $0x28] sm:$0xff] %v223_v5  ;;  %v225_v6 = vld [vmem:[%s765_s16 + $0x300] sm:$0xff] }
  0x32   : > { %v227_v7 = vld [vmem:[%s765_s16 + $0x380] sm:$0xff]  ;;  %226 = vst [vmem:[%s148_s24 + $0x30] sm:$0xff] %v225_v6 }
  0x33   : > { %v229_v8 = vld [vmem:[%s765_s16 + $0x400] sm:$0xff]  ;;  %228 = vst [vmem:[%s148_s24 + $0x38] sm:$0xff] %v227_v7 }
  0x34   : > { %230 = vst [vmem:[%s148_s24 + $0x40] sm:$0xff] %v229_v8  ;;  %v231_v9 = vld [vmem:[%s765_s16 + $0x480] sm:$0xff] }
  0x35   : > { %v233_v10 = vld [vmem:[%s765_s16 + $0x500] sm:$0xff]  ;;  %232 = vst [vmem:[%s148_s24 + $0x48] sm:$0xff] %v231_v9 }
  0x36   : > { %v235_v11 = vld [vmem:[%s765_s16 + $0x580] sm:$0xff]  ;;  %234 = vst [vmem:[%s148_s24 + $0x50] sm:$0xff] %v233_v10 }
  0x37   : > { %236 = vst [vmem:[%s148_s24 + $0x58] sm:$0xff] %v235_v11  ;;  %v237_v12 = vld [vmem:[%s765_s16 + $0x600] sm:$0xff] }
  0x38   : > { %v239_v13 = vld [vmem:[%s765_s16 + $0x680] sm:$0xff]  ;;  %238 = vst [vmem:[%s148_s24 + $0x60] sm:$0xff] %v237_v12 }
  0x39   : > { %v241_v14 = vld [vmem:[%s765_s16 + $0x700] sm:$0xff]  ;;  %240 = vst [vmem:[%s148_s24 + $0x68] sm:$0xff] %v239_v13 }
  0x3a   : > { %242 = vst [vmem:[%s148_s24 + $0x70] sm:$0xff] %v241_v14  ;;  %v243_v15 = vld [vmem:[%s765_s16 + $0x780] sm:$0xff] }
  0x3b   : > { %244 = vst [vmem:[%s148_s24 + $0x78] sm:$0xff] %v243_v15 }
  0x3c PF: > { %p534_p1 = scmp.ge.s32.totalorder %s667_s22, 1  ;;  %p249_p2 = scmp.lt.s32.totalorder %s667_s22, 5 }
  0x3e   : > { %p250_p3 = pnand %p534_p1, %p249_p2 }
  0x3f   : > { %s256_s25 = sand.u32 (!%p250_p3), 1, %s651_s19   ;;  %s280_s26 = sld [smem:[#allocation3 + %s659_s20]] (!%p250_p3) }
  0x40   : > { %253 = sbr.rel (%p250_p3) target bundleno = 92 (0x5c), region = 62  ;;  %s535_s27 = sshll.u32 (!%p250_p3), %s256_s25, 7 }
  0x41   : > { %s277_s28 = sand.u32 (!%p250_p3), 1, %s643_s17   ;;  %s258_s4 = scalar_lea.vmem (!%p250_p3), [#allocation4], %s535_s27 }
  0x42   : > { %s536_s29 = sshll.u32 (!%p250_p3), %s277_s28, 7 }
  0x43   : > { %s791_s17 = scalar_lea.vmem (!%p250_p3), [#allocation5], %s536_s29 }
  0x45   : > { %p281_p4 = scmp.lt.s32.totalorder %s280_s26, 15  ;;  %v289_v16 = vld [vmem:[%s258_s4] sm:$0xff]  ;;  %v290_v17 = vld [vmem:[%s258_s4 + $0x8] sm:$0xff]  ;;  %v291_v18 = vld [vmem:[%s258_s4 + $0x10] sm:$0xff]  ;;  %s351_s19 = sld [smem:[#allocation3 + %s659_s20]] (%p745_p11) }
  0x46   : > { %v292_v19 = vld [vmem:[%s258_s4 + $0x18] sm:$0xff]  ;;  %v293_v20 = vld [vmem:[%s258_s4 + $0x20] sm:$0xff]  ;;  %v294_v21 = vld [vmem:[%s258_s4 + $0x28] sm:$0xff] }
  0x47   : > { %s867_s26 = smov (!%p281_p4, %s280_s26), 15  ;;  %v295_v22 = vld [vmem:[%s258_s4 + $0x30] sm:$0xff]  ;;  %v296_v23 = vld [vmem:[%s258_s4 + $0x38] sm:$0xff]  ;;  %v297_v24 = vld [vmem:[%s258_s4 + $0x40] sm:$0xff] }
  0x48   : > { %s283_s7 = scalar_lea.vmem %s853_s1, %s867_s26  ;;  %v298_v25 = vld [vmem:[%s258_s4 + $0x48] sm:$0xff]  ;;  %v299_v26 = vld [vmem:[%s258_s4 + $0x50] sm:$0xff]  ;;  %v300_v28 = vld [vmem:[%s258_s4 + $0x58] sm:$0xff] }
  0x49   : > { %v537_v27 = vld [vmem:[%s283_s7] ss:$0 sm:$0xff]  ;;  %v302_v34 = vld [vmem:[%s258_s4 + $0x68] sm:$0xff]  ;;  %v303_v35 = vld [vmem:[%s258_s4 + $0x70] sm:$0xff] }
  0x4a   : > { %v301_v29 = vld [vmem:[%s258_s4 + $0x60] sm:$0xff]  ;;  %v312_v30 = vmul.f32 %v537_v27, %v289_v16  ;;  %v313_v31 = vmul.f32 %v537_v27, %v290_v17  ;;  %v314_v32 = vmul.f32 %v537_v27, %v291_v18  ;;  %v315_v33 = vmul.f32 %v537_v27, %v292_v19  ;;  %v304_v36 = vld [vmem:[%s258_s4 + $0x78] sm:$0xff] }
  0x4b   : > { %v316_v37 = vmul.f32 %v537_v27, %v293_v20  ;;  %v317_v38 = vmul.f32 %v537_v27, %v294_v21  ;;  %v318_v39 = vmul.f32 %v537_v27, %v295_v22  ;;  %v319_v40 = vmul.f32 %v537_v27, %v296_v23  ;;  %s539_s30 = sshll.u32 (%p745_p11), %s351_s19, 3 }
  0x4c   : > { %328 = vst [vmem:[%s791_s17] sm:$0xff] %v312_v30  ;;  %329 = vst [vmem:[%s791_s17 + $0x8] sm:$0xff] %v313_v31  ;;  %v320_v41 = vmul.f32 %v537_v27, %v297_v24  ;;  %v321_v42 = vmul.f32 %v537_v27, %v298_v25  ;;  %v322_v43 = vmul.f32 %v537_v27, %v299_v26  ;;  %s356_s11 = scalar_lea.vmem (%p745_p11), %s855_s3, %s539_s30 }
  0x4d   : > { %330 = vst [vmem:[%s791_s17 + $0x10] sm:$0xff] %v314_v32  ;;  %331 = vst [vmem:[%s791_s17 + $0x18] sm:$0xff] %v315_v33  ;;  %v323_v44 = vmul.f32 %v537_v27, %v300_v28  ;;  %v324_v45 = vmul.f32 %v537_v27, %v301_v29  ;;  %v325_v46 = vmul.f32 %v537_v27, %v302_v34 }
  0x4e   : > { %332 = vst [vmem:[%s791_s17 + $0x20] sm:$0xff] %v316_v37  ;;  %333 = vst [vmem:[%s791_s17 + $0x28] sm:$0xff] %v317_v38  ;;  %v326_v47 = vmul.f32 %v537_v27, %v303_v35  ;;  %v327_v48 = vmul.f32 %v537_v27, %v304_v36 }
  0x4f   : > { %334 = vst [vmem:[%s791_s17 + $0x30] sm:$0xff] %v318_v39  ;;  %335 = vst [vmem:[%s791_s17 + $0x38] sm:$0xff] %v319_v40  ;;  %350 = sbr.rel (!%p745_p11) target bundleno = 92 (0x5c), region = 70 }
  0x50   : > { %336 = vst [vmem:[%s791_s17 + $0x40] sm:$0xff] %v320_v41  ;;  %337 = vst [vmem:[%s791_s17 + $0x48] sm:$0xff] %v321_v42 }
  0x51   : > { %338 = vst [vmem:[%s791_s17 + $0x50] sm:$0xff] %v322_v43  ;;  %339 = vst [vmem:[%s791_s17 + $0x58] sm:$0xff] %v323_v44 }
  0x52   : > { %340 = vst [vmem:[%s791_s17 + $0x60] sm:$0xff] %v324_v45  ;;  %341 = vst [vmem:[%s791_s17 + $0x68] sm:$0xff] %v325_v46 }
  0x53   : > { %342 = vst [vmem:[%s791_s17 + $0x70] sm:$0xff] %v326_v47  ;;  %343 = vst [vmem:[%s791_s17 + $0x78] sm:$0xff] %v327_v48  ;;  %v415_v49 = vld [vmem:[%s791_s17] sm:$0xff] (%p745_p11)  ;;  %v417_v50 = vld [vmem:[%s791_s17 + $0x8] sm:$0xff] (%p745_p11) }
  0x54   : > { %v419_v51 = vld [vmem:[%s791_s17 + $0x10] sm:$0xff]  ;;  %v421_v52 = vld [vmem:[%s791_s17 + $0x18] sm:$0xff]  ;;  %416 = vst [vmem:[%s356_s11] sm:$0xff] %v415_v49  ;;  %418 = vst [vmem:[%s356_s11 + $0x80] sm:$0xff] %v417_v50 }
  0x55   : > { %v423_v53 = vld [vmem:[%s791_s17 + $0x20] sm:$0xff]  ;;  %v425_v54 = vld [vmem:[%s791_s17 + $0x28] sm:$0xff]  ;;  %420 = vst [vmem:[%s356_s11 + $0x100] sm:$0xff] %v419_v51  ;;  %422 = vst [vmem:[%s356_s11 + $0x180] sm:$0xff] %v421_v52 }
  0x56   : > { %v427_v55 = vld [vmem:[%s791_s17 + $0x30] sm:$0xff]  ;;  %v429_v56 = vld [vmem:[%s791_s17 + $0x38] sm:$0xff]  ;;  %424 = vst [vmem:[%s356_s11 + $0x200] sm:$0xff] %v423_v53  ;;  %426 = vst [vmem:[%s356_s11 + $0x280] sm:$0xff] %v425_v54 }
  0x57   : > { %v431_v57 = vld [vmem:[%s791_s17 + $0x40] sm:$0xff]  ;;  %v433_v58 = vld [vmem:[%s791_s17 + $0x48] sm:$0xff]  ;;  %428 = vst [vmem:[%s356_s11 + $0x300] sm:$0xff] %v427_v55  ;;  %430 = vst [vmem:[%s356_s11 + $0x380] sm:$0xff] %v429_v56 }
  0x58   : > { %v435_v59 = vld [vmem:[%s791_s17 + $0x50] sm:$0xff]  ;;  %v437_v60 = vld [vmem:[%s791_s17 + $0x58] sm:$0xff]  ;;  %432 = vst [vmem:[%s356_s11 + $0x400] sm:$0xff] %v431_v57  ;;  %434 = vst [vmem:[%s356_s11 + $0x480] sm:$0xff] %v433_v58 }
  0x59   : > { %v439_v61 = vld [vmem:[%s791_s17 + $0x60] sm:$0xff]  ;;  %v441_v62 = vld [vmem:[%s791_s17 + $0x68] sm:$0xff]  ;;  %436 = vst [vmem:[%s356_s11 + $0x500] sm:$0xff] %v435_v59  ;;  %438 = vst [vmem:[%s356_s11 + $0x580] sm:$0xff] %v437_v60 }
  0x5a   : > { %v443_v63 = vld [vmem:[%s791_s17 + $0x70] sm:$0xff]  ;;  %v445_v0 = vld [vmem:[%s791_s17 + $0x78] sm:$0xff]  ;;  %440 = vst [vmem:[%s356_s11 + $0x600] sm:$0xff] %v439_v61  ;;  %442 = vst [vmem:[%s356_s11 + $0x680] sm:$0xff] %v441_v62 }
  0x5b   : > { %444 = vst [vmem:[%s356_s11 + $0x700] sm:$0xff] %v443_v63  ;;  %446 = vst [vmem:[%s356_s11 + $0x780] sm:$0xff] %v445_v0 }
  0x5c PF: > { %s19_s22 = sadd.s32 1, %s667_s22   ;;  %s858_s17 = smov %s647_s18 }
  0x5d   : > { %p16_p5 = scmp.ge.s32.totalorder %s19_s22, 6   ;;  %s859_s18 = smov %s755_s9 }
  0x5e   : > { %s860_s19 = smov %s655_s0  ;;  %s861_s0 = smov %s752_s8 }
  0x5f   : > { %s862_s20 = smov %s663_s21  ;;  %s863_s21 = smov %s865_s23 }
  0x60   :  { %18 = sbr.rel (!%p16_p5) target bundleno = 19 (0x13), region = 142 }

</bundles_post_ra>
